<compile_context>
chip_gen: v7x
topology: tpu7x:2x2x1
jax: 0.10.0
libtpu: 0.0.40
codegen_flags: <defaults>
</compile_context>

<pallas_src>
import jax
import jax.numpy as jnp
from jax.experimental import pallas as pl
from jax.experimental.pallas import tpu as pltpu

_MIB = 1024 * 1024
_VMEM_TILE_BUDGET = 36 * _MIB   # working-set cap used when picking tiles
_VMEM_LIMIT_CAP = 48 * _MIB     # scoped-VMEM request cap (fits v7x's 64 MiB)
_FUSED_BUDGET = 24 * _MIB       # "whole problem in VMEM" threshold


# ----------------------------- small helpers --------------------------------
def _round_up(x, m):
    return ((x + m - 1) // m) * m


def _pad_gran(n):
    # Padding granularity for the node axis: larger N -> larger granularity so
    # 256/512-class tiles always divide the padded size.
    if n >= 4096:
        return 512
    if n >= 1024:
        return 256
    return 128


def _pad_cast(x, shape, dtype):
    x = x.astype(dtype)
    if x.shape == tuple(shape):
        return x
    return jnp.zeros(shape, dtype).at[tuple(slice(0, s) for s in x.shape)].set(x)


def _tile_candidates(dim, cap, prefer_multi=False):
    cands = [c for c in (1024, 512, 256, 128) if c <= cap and dim % c == 0]
    if not cands:
        cands = [dim]
    if prefer_multi:
        multi = [c for c in cands if dim // c >= 2]
        if multi:                 # keep >=2 steps on the parallel axis (v7x 2 TCs)
            cands = multi
    return cands                  # descending


def _first_fit(cands_a, cands_b, bytes_fn, budget):
    for a in cands_a:
        for b in cands_b:
            if bytes_fn(a, b) <= budget:
                return a, b
    return cands_a[-1], cands_b[-1]


def _vmem_limit(need_bytes):
    # Explicit scoped-VMEM request: >= actual need with headroom, capped below
    # v7x's 64 MiB physical VMEM.
    return int(min(max(need_bytes * 3 // 2, 32 * _MIB), _VMEM_LIMIT_CAP))


# ------------------------------- kernels -------------------------------------
def _fused_kernel(g_ref, h_ref, w_ref, b_ref, o_ref):
    # hw = h @ W.T (f32 accumulate), cast once to bf16 for the second MXU pass.
    hw = jax.lax.dot_general(
        h_ref[...], w_ref[...],
        dimension_numbers=(((1,), (1,)), ((), ())),
        preferred_element_type=jnp.float32).astype(jnp.bfloat16)
    acc = jnp.dot(g_ref[...], hw, preferred_element_type=jnp.float32)
    o_ref[...] = jnp.maximum(acc + b_ref[...], 0.0).astype(o_ref.dtype)


def _proj_kernel(h_ref, w_ref, hw_ref):
    # Contract h's feature axis (1) with the weight's in_dim axis (1): no
    # transposed weight copy is materialized.
    hw_ref[...] = jax.lax.dot_general(
        h_ref[...], w_ref[...],
        dimension_numbers=(((1,), (1,)), ((), ())),
        preferred_element_type=jnp.float32).astype(hw_ref.dtype)


def _agg_resident_kernel(g_ref, hw_ref, b_ref, o_ref):
    # hw is a single VMEM-resident block; one dot per row strip of g.
    acc = jnp.dot(g_ref[...], hw_ref[...], preferred_element_type=jnp.float32)
    o_ref[...] = jnp.maximum(acc + b_ref[...], 0.0).astype(o_ref.dtype)


def _agg_stream_kernel(g_ref, hw_ref, b_ref, o_ref, acc_ref):
    k = pl.program_id(1)

    @pl.when(k == 0)
    def _():
        acc_ref[...] = jnp.zeros_like(acc_ref)

    acc_ref[...] += jnp.dot(g_ref[...], hw_ref[...],
                            preferred_element_type=jnp.float32)

    @pl.when(k == pl.num_programs(1) - 1)
    def _():
        o_ref[...] = jnp.maximum(acc_ref[...] + b_ref[...], 0.0).astype(o_ref.dtype)


# ------------------------------- forward -------------------------------------
def gcn_forward(g, h, weight, bias, *, force_tiled=False, force_stream=False):
    """g: (N, N), h: (N, in_dim), weight: (out_dim, in_dim), bias: (out_dim,)."""
    n, in_dim = h.shape
    out_dim = weight.shape[0]

    np_ = _round_up(n, _pad_gran(n))
    inp = _round_up(in_dim, 128)
    outp = _round_up(out_dim, 128)

    g_p = _pad_cast(g, (np_, np_), jnp.bfloat16)
    h_p = _pad_cast(h, (np_, inp), jnp.bfloat16)
    w_p = _pad_cast(weight, (outp, inp), jnp.bfloat16)
    b_p = _pad_cast(bias.reshape(1, out_dim), (1, outp), jnp.float32)

    # ------------------------ fully fused path ------------------------------
    fused_need = ((np_ * np_ + np_ * inp + outp * inp) * 2   # bf16 inputs
                  + outp * 4                                 # bias
                  + 2 * np_ * outp * 4)                      # f32 out + hw temp
    if not force_tiled and fused_need <= _FUSED_BUDGET:
        out_p = pl.pallas_call(
            _fused_kernel,
            out_shape=jax.ShapeDtypeStruct((np_, outp), jnp.float32),
            compiler_params=pltpu.CompilerParams(
                vmem_limit_bytes=_vmem_limit(fused_need)),
            cost_estimate=pl.CostEstimate(
                flops=2 * np_ * inp * outp + 2 * np_ * np_ * outp,
                transcendentals=0,
                bytes_accessed=int(fused_need)),
        )(g_p, h_p, w_p, b_p)
        return out_p[:n, :out_dim].astype(h.dtype)

    # -------------------- tiled path: projection -----------------------------
    tm_p_c = _tile_candidates(np_, 512, prefer_multi=True)
    tn_p_c = _tile_candidates(outp, 512)

    def _proj_bytes(tm, tn):
        return 2 * (tm * inp * 2) + 2 * (tn * inp * 2) + 2 * (tm * tn * 2)

    tm_p, tn_p = _first_fit(tm_p_c, tn_p_c, _proj_bytes, _VMEM_TILE_BUDGET)

    hw = pl.pallas_call(
        _proj_kernel,
        out_shape=jax.ShapeDtypeStruct((np_, outp), jnp.bfloat16),
        grid_spec=pltpu.PrefetchScalarGridSpec(
            num_scalar_prefetch=0,
            grid=(np_ // tm_p, outp // tn_p),
            in_specs=[pl.BlockSpec((tm_p, inp), lambda i, j: (i, 0)),
                      pl.BlockSpec((tn_p, inp), lambda i, j: (j, 0))],
            out_specs=pl.BlockSpec((tm_p, tn_p), lambda i, j: (i, j)),
        ),
        compiler_params=pltpu.CompilerParams(
            dimension_semantics=("parallel", "parallel"),
            vmem_limit_bytes=_vmem_limit(_proj_bytes(tm_p, tn_p))),
        cost_estimate=pl.CostEstimate(
            flops=2 * np_ * inp * outp,
            transcendentals=0,
            bytes_accessed=int(np_ * inp * 2 + outp * inp * 2 + np_ * outp * 2)),
    )(h_p, w_p)

    # ---------------- tiled path: aggregation + fused epilogue ---------------
    hw_bytes = np_ * outp * 2
    rows_c = _tile_candidates(np_, 1024, prefer_multi=True)
    agg_bytes_hbm = int(np_ * np_ * 2 + hw_bytes + outp * 4 + np_ * outp * 4)
    agg_flops = 2 * np_ * np_ * outp

    # Variant B1: hw fully VMEM-resident (constant-index block, DMA'd once);
    # whole contraction per row strip of g -> no reduction axis, no scratch.
    def _b1_bytes(tm):
        return (2 * (tm * np_ * 2) + 2 * hw_bytes
                + 2 * (tm * outp * 4) + 2 * outp * 4)

    b1_tm = None
    if not force_stream:
        for c in rows_c:
            if _b1_bytes(c) <= _VMEM_TILE_BUDGET:
                b1_tm = c
                break

    if b1_tm is not None:
        out_p = pl.pallas_call(
            _agg_resident_kernel,
            out_shape=jax.ShapeDtypeStruct((np_, outp), jnp.float32),
            grid_spec=pltpu.PrefetchScalarGridSpec(
                num_scalar_prefetch=0,
                grid=(np_ // b1_tm,),
                in_specs=[pl.BlockSpec((b1_tm, np_), lambda i: (i, 0)),
                          pl.BlockSpec((np_, outp), lambda i: (0, 0)),
                          pl.BlockSpec((1, outp), lambda i: (0, 0))],
                out_specs=pl.BlockSpec((b1_tm, outp), lambda i: (i, 0)),
            ),
            compiler_params=pltpu.CompilerParams(
                dimension_semantics=("parallel",),
                vmem_limit_bytes=_vmem_limit(_b1_bytes(b1_tm))),
            cost_estimate=pl.CostEstimate(
                flops=agg_flops, transcendentals=0,
                bytes_accessed=agg_bytes_hbm),
        )(g_p, hw, b_p)
    else:
        # Variant B2: stream hw per reduction tile, f32 VMEM accumulator,
        # reduction axis last ("arbitrary"), decoupled tm/tk tiles.
        cols_c = _tile_candidates(np_, 1024)

        def _b2_bytes(tm, tk):
            return (2 * (tm * tk * 2) + 2 * (tk * outp * 2)
                    + 2 * (tm * outp * 4) + tm * outp * 4 + 2 * outp * 4)

        tm_a, tk_a = _first_fit([c for c in rows_c if c <= 512] or rows_c,
                                cols_c, _b2_bytes, _VMEM_TILE_BUDGET)
        out_p = pl.pallas_call(
            _agg_stream_kernel,
            out_shape=jax.ShapeDtypeStruct((np_, outp), jnp.float32),
            grid_spec=pltpu.PrefetchScalarGridSpec(
                num_scalar_prefetch=0,
                grid=(np_ // tm_a, np_ // tk_a),
                in_specs=[pl.BlockSpec((tm_a, tk_a), lambda i, k: (i, k)),
                          pl.BlockSpec((tk_a, outp), lambda i, k: (k, 0)),
                          pl.BlockSpec((1, outp), lambda i, k: (0, 0))],
                out_specs=pl.BlockSpec((tm_a, outp), lambda i, k: (i, 0)),
                scratch_shapes=[pltpu.VMEM((tm_a, outp), jnp.float32)],
            ),
            compiler_params=pltpu.CompilerParams(
                dimension_semantics=("parallel", "arbitrary"),
                vmem_limit_bytes=_vmem_limit(_b2_bytes(tm_a, tk_a))),
            cost_estimate=pl.CostEstimate(
                flops=agg_flops, transcendentals=0,
                bytes_accessed=agg_bytes_hbm),
        )(g_p, hw, b_p)

    return out_p[:n, :out_dim].astype(h.dtype)


# ------------------------------ references ----------------------------------
def _reference_bf16(g, h, weight, bias):
    # Same bf16-MXU math as the kernels (tight tolerance).
    g_bf = g.astype(jnp.bfloat16)
    h_bf = h.astype(jnp.bfloat16)
    w_bf = weight.astype(jnp.bfloat16)
    hw = jax.lax.dot_general(
        h_bf, w_bf, dimension_numbers=(((1,), (1,)), ((), ())),
        preferred_element_type=jnp.float32).astype(jnp.bfloat16)
    return jnp.maximum(
        jnp.dot(g_bf, hw, preferred_element_type=jnp.float32) + bias, 0.0)


def _reference_f32(g, h, weight, bias):
    # Full-precision PyTorch-order semantics (loose tolerance: bf16 inputs +
    # matmul reorder).
    return jnp.maximum(jnp.matmul(jnp.matmul(g, h), weight.T) + bias, 0.0)


if __name__ == "__main__":
    key = jax.random.PRNGKey(0)

    def make_inputs(k, n, in_dim, out_dim):
        k_g, k_h, k_w, k_b = jax.random.split(k, 4)
        g_raw = jax.random.uniform(k_g, (n, n), dtype=jnp.float32)
        g = g_raw / jnp.sum(g_raw, axis=-1, keepdims=True)   # row-normalized adjacency
        h = jax.random.normal(k_h, (n, in_dim), dtype=jnp.float32)
        weight = jax.random.normal(k_w, (out_dim, in_dim), dtype=jnp.float32) * 0.05
        bias = jax.random.normal(k_b, (out_dim,), dtype=jnp.float32) * 0.05
        return g, h, weight, bias

    k1, k2 = jax.random.split(key)

    # ---- Check 1: demo config -> fully fused single-kernel path. -----------
    g, h, weight, bias = make_inputs(k1, 128, 256, 128)
    out = gcn_forward(g, h, weight, bias)
    jax.block_until_ready(out)
    assert out.shape == (128, 128)
    assert jnp.allclose(out, _reference_bf16(g, h, weight, bias), atol=2e-3, rtol=2e-3)
    assert jnp.allclose(out, _reference_f32(g, h, weight, bias), atol=5e-2, rtol=5e-2)

    # ---- Check 2: tiled path with VMEM-resident hw (non-aligned dims). -----
    g2, h2, w2, b2 = make_inputs(k2, 300, 200, 70)
    out2 = gcn_forward(g2, h2, w2, b2, force_tiled=True)
    jax.block_until_ready(out2)
    assert out2.shape == (300, 70)
    assert jnp.allclose(out2, _reference_bf16(g2, h2, w2, b2), atol=2e-3, rtol=2e-3)
    assert jnp.allclose(out2, _reference_f32(g2, h2, w2, b2), atol=5e-2, rtol=5e-2)

    # ---- Check 3: tiled path, streamed-hw accumulator variant. --------------
    out3 = gcn_forward(g2, h2, w2, b2, force_tiled=True, force_stream=True)
    jax.block_until_ready(out3)
    assert jnp.allclose(out3, _reference_bf16(g2, h2, w2, b2), atol=2e-3, rtol=2e-3)

    print("KERNEL_OK")
</pallas_src>

<mosaic_0001>
module attributes {stable_mosaic.version = 11 : i64} {
  func.func @_fused_kernel(%arg0: memref<128x128xbf16, #tpu.memory_space<vmem>>, %arg1: memref<128x256xbf16, #tpu.memory_space<vmem>>, %arg2: memref<128x256xbf16, #tpu.memory_space<vmem>>, %arg3: memref<1x128xf32, #tpu.memory_space<vmem>>, %arg4: memref<128x128xf32, #tpu.memory_space<vmem>>) attributes {dimension_semantics = [], scalar_prefetch = 0 : i64, scratch_operands = 0 : i64, tpu.core_type = #tpu.core_type<tc>} {
    %c0 = arith.constant 0 : index
    %c0_0 = arith.constant 0 : index
    %0 = vector.load %arg1[%c0, %c0_0] : memref<128x256xbf16, #tpu.memory_space<vmem>>, vector<128x256xbf16>
    %c0_1 = arith.constant 0 : index
    %c0_2 = arith.constant 0 : index
    %1 = vector.load %arg2[%c0_1, %c0_2] : memref<128x256xbf16, #tpu.memory_space<vmem>>, vector<128x256xbf16>
    %cst = arith.constant dense<0.000000e+00> : vector<128x128xf32>
    %2 = tpu.matmul %0, %1, %cst {dimension_numbers = #tpu.dot_dimension_numbers<[1], [1], [0], [0], [0, 0, 1, 0], [], []>} : vector<128x256xbf16>, vector<128x256xbf16>, vector<128x128xf32> -> vector<128x128xf32>
    %3 = arith.truncf %2 : vector<128x128xf32> to vector<128x128xbf16>
    %c0_3 = arith.constant 0 : index
    %c0_4 = arith.constant 0 : index
    %4 = vector.load %arg0[%c0_3, %c0_4] : memref<128x128xbf16, #tpu.memory_space<vmem>>, vector<128x128xbf16>
    %cst_5 = arith.constant dense<0.000000e+00> : vector<128x128xf32>
    %5 = tpu.matmul %4, %3, %cst_5 {dimension_numbers = #tpu.dot_dimension_numbers<[1], [0], [0], [1], [0, 0, 1, 1], [], []>} : vector<128x128xbf16>, vector<128x128xbf16>, vector<128x128xf32> -> vector<128x128xf32>
    %c0_6 = arith.constant 0 : index
    %c0_7 = arith.constant 0 : index
    %6 = vector.load %arg3[%c0_6, %c0_7] : memref<1x128xf32, #tpu.memory_space<vmem>>, vector<1x128xf32>
    %7 = vector.broadcast %6 : vector<1x128xf32> to vector<128x128xf32>
    %8 = arith.addf %5, %7 : vector<128x128xf32>
    %cst_8 = arith.constant 0.000000e+00 : f32
    %9 = vector.broadcast %cst_8 : f32 to vector<128x128xf32>
    %10 = arith.maximumf %8, %9 : vector<128x128xf32>
    %c0_9 = arith.constant 0 : index
    %c0_10 = arith.constant 0 : index
    %11 = vector.load %arg4[%c0_9, %c0_10] : memref<128x128xf32, #tpu.memory_space<vmem>>, vector<128x128xf32>
    tpu.vector_store %arg4[%c0_9, %c0_10], %10 {strides = array<i32>} : memref<128x128xf32, #tpu.memory_space<vmem>>, vector<128x128xf32>,
    return
  }
}

</mosaic_0001>

<bundles_post_ra>
// kernel: tpu_custom_call.1
= control target key start
LH: loop header
LB: loop body
LE: loop exit
PB: predicated region body
PF: predicated region fallthrough
CT: control target
= control target key end

     0   :  { %9 = vsyncpa [#allocation3], 0  ;;  %s915_s0 = inlined_call_operand.hbm [shape: bf16[128,128], index: 0, kind: input, shape index: {}]   ;;  %s916_s1 = inlined_call_operand.hbm [shape: bf16[128,256], index: 1, kind: input, shape index: {}]   ;;  %s917_s2 = inlined_call_operand.hbm [shape: bf16[128,256], index: 2, kind: input, shape index: {}]   ;;  %s918_s3 = inlined_call_operand.vmem [shape: f32[1,128], index: 3, kind: input, shape index: {}]   ;;  %s919_s4 = inlined_call_operand.hbm [shape: f32[128,128], index: 4, kind: output, shape index: {}]  }
   0x1   :  { %10 = vsyncpa [#allocation6], 0 }
   0x2   :  { %11 = vsyncpa [#allocation4], 0  ;;  %s822_s15 = smov [#allocation5]   ;;  %s728_s19 = scalar_lea.hbm %s916_s1, 2048 }
   0x3   :  { %s29_s16 = sshll.u32 %s822_s15, 4  ;;  %p729_p0 = scmp.ne.s32.totalorder %s916_s1, %s728_s19  ;;  %s30_s16 = int_to_ptr.vmem [resolvable:$true] %s29_s16 }
   0x4   :  { %p732_p1 = scmp.lt.u32.totalorder %s728_s19, %s916_s1 }
   0x6   :  { %p734_p2 = pnand %p732_p1, %p729_p0 }
   0x8   :  { %737 = shalt.err (!%p734_p2)
}
   0x9   :  { %s738_s24 = scalar_lea.vmem %s30_s16, 2048  ;;  %p743_p4 = scmp.lt.s32.totalorder %s30_s16, %s30_s16 }
   0xa   :  { %p739_p3 = scmp.ne.s32.totalorder %s30_s16, %s738_s24  ;;  %p744_p5 = scmp.lt.s32.totalorder %s738_s24, %s738_s24 }
   0xc   :  { %p745_p6 = por %p744_p5, %p743_p4 }
   0xe   :  { %p746_p7 = pnand %p745_p6, %p739_p3 }
  0x10   :  { %749 = shalt.err (!%p746_p7)
}
  0x11   :  { %s823_s25 = smov 128   ;;  %s824_s26 = smov 8  }
  0x12   :  { %35 = dma.hbm_to_vmem [thread:$0]  %s916_s1, 2048, %s30_s16, [#allocation6], %s823_s25, %s823_s25, %s824_s26  }
  0x13   :  { %s825_s29 = smov [#allocation2]   ;;  %s750_s7 = scalar_lea.hbm %s915_s0, 1024 }
  0x14   :  { %s17_s30 = sshll.u32 %s825_s29, 4  ;;  %p751_p8 = scmp.ne.s32.totalorder %s915_s0, %s750_s7  ;;  %s18_s30 = int_to_ptr.vmem [resolvable:$true] %s17_s30 }
  0x15   :  { %p754_p9 = scmp.lt.u32.totalorder %s750_s7, %s915_s0 }
  0x17   :  { %p756_p10 = pnand %p754_p9, %p751_p8 }
  0x19   :  { %759 = shalt.err (!%p756_p10)
}
  0x1a   :  { %s760_s12 = scalar_lea.vmem %s18_s30, 1024  ;;  %p765_p12 = scmp.lt.s32.totalorder %s18_s30, %s18_s30 }
  0x1b   :  { %p761_p11 = scmp.ne.s32.totalorder %s18_s30, %s760_s12  ;;  %p766_p13 = scmp.lt.s32.totalorder %s760_s12, %s760_s12 }
  0x1d   :  { %p767_p0 = por %p766_p13, %p765_p12 }
  0x1f   :  { %p768_p1 = pnand %p767_p0, %p761_p11 }
  0x21   :  { %771 = shalt.err (!%p768_p1)
}
  0x22   :  { %s826_s1 = smov 64   ;;  %s827_s13 = smov 4  }
  0x23   :  { %23 = dma.hbm_to_vmem [thread:$0]  %s915_s0, 1024, %s18_s30, [#allocation3], %s826_s1, %s826_s1, %s827_s13  }
  0x24   :  { %s828_s16 = smov [#allocation7]   ;;  %s772_s20 = scalar_lea.hbm %s917_s2, 2048 }
  0x25   :  { %s41_s17 = sshll.u32 %s828_s16, 4  ;;  %p773_p2 = scmp.ne.s32.totalorder %s917_s2, %s772_s20  ;;  %s42_s17 = int_to_ptr.vmem [resolvable:$true] %s41_s17 }
  0x26   :  { %p776_p3 = scmp.lt.u32.totalorder %s772_s20, %s917_s2 }
  0x28   :  { %p778_p4 = pnand %p776_p3, %p773_p2 }
  0x2a   :  { %781 = shalt.err (!%p778_p4)
}
  0x2b   :  { %s782_s27 = scalar_lea.vmem %s42_s17, 2048  ;;  %p787_p6 = scmp.lt.s32.totalorder %s42_s17, %s42_s17 }
  0x2c   :  { %p783_p5 = scmp.ne.s32.totalorder %s42_s17, %s782_s27  ;;  %p788_p7 = scmp.lt.s32.totalorder %s782_s27, %s782_s27 }
  0x2e   :  { %p789_p8 = por %p788_p7, %p787_p6 }
  0x30   :  { %p790_p9 = pnand %p789_p8, %p783_p5 }
  0x32   :  { %793 = shalt.err (!%p790_p9)
}
  0x33   :  { %47 = dma.hbm_to_vmem [thread:$0]  %s917_s2, 2048, %s42_s17, [#allocation6], %s823_s25, %s823_s25, %s824_s26  }
  0x34   :  { %816 = dma.done.wait [#allocation3], 1024  }
  0x35   :  { %817 = vsyncadd [#allocation3], 4294966272 }
  0x36   :  { %818 = dma.done.wait [#allocation6], 4096  }
  0x37   :  { %819 = vsyncadd [#allocation6], 4294963200  ;;  %v672_v0 = vld [vmem:[#allocation7 + $0x4] ss:$8 sps:$4 sm:$0xff]   ;;  %v674_v1 = vld [vmem:[#allocation7] ss:$8 sps:$4 sm:$0xff]  }
  0x38   :  { %252 = vmatprep.subr.bf16.mxu0 %v672_v0  ;;  %v675_v2 = vld [vmem:[#allocation7 + $0x14] ss:$8 sps:$4 sm:$0xff]   ;;  %v677_v3 = vld [vmem:[#allocation7 + $0x10] ss:$8 sps:$4 sm:$0xff]   ;;  %v678_v4 = vld [vmem:[#allocation7 + $0x24] ss:$8 sps:$4 sm:$0xff]  }
  0x39   :  { %253 = vmatpush1.bf16.xpose.msra.mxu0 %v674_v1  ;;  %v698_v5 = vld [vmem:[#allocation5 + $0x4] ss:$8 sps:$4 sm:$0xff]   ;;  %v680_v6 = vld [vmem:[#allocation7 + $0x20] ss:$8 sps:$4 sm:$0xff]   ;;  %v681_v7 = vld [vmem:[#allocation7 + $0x34] ss:$8 sps:$4 sm:$0xff]  }
  0x3a   :  { %254 = vmatprep.subr.bf16.mxu0 %v675_v2  ;;  %284 = vmatprep.mubr.bf16.mxu0 %v698_v5  ;;  %v683_v8 = vld [vmem:[#allocation7 + $0x30] ss:$8 sps:$4 sm:$0xff]   ;;  %v684_v9 = vld [vmem:[#allocation7 + $0x44] ss:$8 sps:$4 sm:$0xff]   ;;  %v686_v10 = vld [vmem:[#allocation7 + $0x40] ss:$8 sps:$4 sm:$0xff]  }
  0x3b   :  { %v687_v11 = vld [vmem:[#allocation7 + $0x54] ss:$8 sps:$4 sm:$0xff]   ;;  %v689_v12 = vld [vmem:[#allocation7 + $0x50] ss:$8 sps:$4 sm:$0xff]   ;;  %v690_v13 = vld [vmem:[#allocation7 + $0x64] ss:$8 sps:$4 sm:$0xff]  }
  0x3c   :  { %v692_v14 = vld [vmem:[#allocation7 + $0x60] ss:$8 sps:$4 sm:$0xff]   ;;  %v693_v15 = vld [vmem:[#allocation7 + $0x74] ss:$8 sps:$4 sm:$0xff]   ;;  %v695_v16 = vld [vmem:[#allocation7 + $0x70] ss:$8 sps:$4 sm:$0xff]  }
  0x3d   :  { %v696_v17 = vld [vmem:[#allocation5] ss:$8 sps:$4 sm:$0xff]   ;;  %v699_v18 = vld [vmem:[#allocation5 + $0x14] ss:$8 sps:$4 sm:$0xff]   ;;  %v701_v19 = vld [vmem:[#allocation5 + $0x10] ss:$8 sps:$4 sm:$0xff]  }
  0x3e   :  { %v702_v20 = vld [vmem:[#allocation5 + $0x24] ss:$8 sps:$4 sm:$0xff]   ;;  %v704_v21 = vld [vmem:[#allocation5 + $0x20] ss:$8 sps:$4 sm:$0xff]   ;;  %v705_v22 = vld [vmem:[#allocation5 + $0x34] ss:$8 sps:$4 sm:$0xff]  }
  0x3f   :  { %v707_v23 = vld [vmem:[#allocation5 + $0x30] ss:$8 sps:$4 sm:$0xff]   ;;  %v708_v24 = vld [vmem:[#allocation5 + $0x44] ss:$8 sps:$4 sm:$0xff]   ;;  %v710_v25 = vld [vmem:[#allocation5 + $0x40] ss:$8 sps:$4 sm:$0xff]  }
  0x40   :  { %v711_v26 = vld [vmem:[#allocation5 + $0x54] ss:$8 sps:$4 sm:$0xff]   ;;  %v713_v27 = vld [vmem:[#allocation5 + $0x50] ss:$8 sps:$4 sm:$0xff]   ;;  %v714_v28 = vld [vmem:[#allocation5 + $0x64] ss:$8 sps:$4 sm:$0xff]  }
  0x41   :  { %255 = vmatpush1.bf16.xpose.msra.mxu0 %v677_v3  ;;  %v716_v29 = vld [vmem:[#allocation5 + $0x60] ss:$8 sps:$4 sm:$0xff]   ;;  %v717_v30 = vld [vmem:[#allocation5 + $0x74] ss:$8 sps:$4 sm:$0xff]   ;;  %v719_v31 = vld [vmem:[#allocation5 + $0x70] ss:$8 sps:$4 sm:$0xff]  }
  0x42   :  { %256 = vmatprep.subr.bf16.mxu0 %v678_v4  ;;  %v720_v32 = vld [vmem:[#allocation2] sm:$0xff]  }
  0x43   :  { %648 = vmatprep.mubr.bf16.mxu1 %v720_v32 }
  0x49   :  { %257 = vmatpush1.bf16.xpose.msra.mxu0 %v680_v6 }
  0x4a   :  { %258 = vmatprep.subr.bf16.mxu0 %v681_v7 }
  0x51   :  { %259 = vmatpush1.bf16.xpose.msra.mxu0 %v683_v8 }
  0x52   :  { %260 = vmatprep.subr.bf16.mxu0 %v684_v9  ;;  %v721_v9 = vld [vmem:[#allocation2 + $0x8] sm:$0xff]  }
  0x59   :  { %261 = vmatpush1.bf16.xpose.msra.mxu0 %v686_v10  ;;  %v722_v10 = vld [vmem:[#allocation2 + $0x10] sm:$0xff]  }
  0x5a   :  { %262 = vmatprep.subr.bf16.mxu0 %v687_v11  ;;  %v723_v11 = vld [vmem:[#allocation2 + $0x18] sm:$0xff]  }
  0x61   :  { %263 = vmatpush1.bf16.xpose.msra.mxu0 %v689_v12  ;;  %v724_v12 = vld [vmem:[#allocation2 + $0x20] sm:$0xff]  }
  0x62   :  { %264 = vmatprep.subr.bf16.mxu0 %v690_v13  ;;  %v725_v13 = vld [vmem:[#allocation2 + $0x28] sm:$0xff]  }
  0x69   :  { %265 = vmatpush1.bf16.xpose.msra.mxu0 %v692_v14  ;;  %v726_v14 = vld [vmem:[#allocation2 + $0x30] sm:$0xff]  }
  0x6a   :  { %266 = vmatprep.subr.bf16.mxu0 %v693_v15  ;;  %v727_v15 = vld [vmem:[#allocation2 + $0x38] sm:$0xff]  }
  0x71   :  { %267 = vmatpush1.bf16.xpose.msra.mxu0 %v695_v16  ;;  %v607_v16 = vld [vmem:[%s918_s3] ss:$0 sm:$0xff]  ;;  %s829_s3 = smov [#allocation8]  }
  0x72   :  { %s562_s30 = sshll.u32 %s829_s3, 4  ;;  %s563_s30 = int_to_ptr.vmem [resolvable:$true] %s562_s30 }
  0x73   :  { %s794_s5 = scalar_lea.vmem %s563_s30, 2048  ;;  %p799_p11 = scmp.lt.s32.totalorder %s563_s30, %s563_s30 }
  0x74   :  { %p795_p10 = scmp.ne.s32.totalorder %s563_s30, %s794_s5  ;;  %p800_p12 = scmp.lt.s32.totalorder %s794_s5, %s794_s5 }
  0x76   :  { %p801_p13 = por %p800_p12, %p799_p11 }
  0x78   :  { %285 = vmatmul.mubr.bf16.vlgmr.msra.gmra.mrb[0].mxu0 %v696_v17  ;;  %p802_p0 = pnand %p801_p13, %p795_p10 }
  0x79   :  { %292 = vmatprep.mubr.bf16.mxu0 %v699_v18 }
  0x80   :  { %293 = vmatmul.mubr.bf16.gmra.mrb[4].mxu0 %v701_v19 }
  0x81   :  { %300 = vmatprep.mubr.bf16.mxu0 %v702_v20 }
  0x88   :  { %301 = vmatmul.mubr.bf16.gmra.mrb[8].mxu0 %v704_v21 }
  0x89   :  { %308 = vmatprep.mubr.bf16.mxu0 %v705_v22 }
  0x90   :  { %309 = vmatmul.mubr.bf16.gmra.mrb[12].mxu0 %v707_v23 }
  0x91   :  { %316 = vmatprep.mubr.bf16.mxu0 %v708_v24 }
  0x98   :  { %317 = vmatmul.mubr.bf16.gmra.mrb[16].mxu0 %v710_v25 }
  0x99   :  { %324 = vmatprep.mubr.bf16.mxu0 %v711_v26 }
  0xa0   :  { %325 = vmatmul.mubr.bf16.gmra.mrb[20].mxu0 %v713_v27 }
  0xa1   :  { %332 = vmatprep.mubr.bf16.mxu0 %v714_v28 }
  0xa8   :  { %333 = vmatmul.mubr.bf16.gmra.mrb[24].mxu0 %v716_v29 }
  0xa9   :  { %340 = vmatprep.mubr.bf16.mxu0 %v717_v30 }
  0xb0   :  { %341 = vmatmul.mubr.bf16.gmra.mrb[28].mxu0 %v719_v31 }
 0x14b   :  { %v286_v33 = vpop.f32.mrb[0].mxu0 }
 0x14c   :  { %v288_v34 = vpop.f32.mrb[1].mxu0 }
 0x14d   :  { %v289_v35 = vpop.f32.mrb[2].mxu0 }
 0x14e   :  { %v349_v36 = vpack.c.bf16 %v289_v35, %v286_v33  ;;  %v291_v37 = vpop.f32.mrb[3].mxu0 }
 0x150   :  { %632 = vmatprep.subr.bf16.mxu1 %v349_v36 }
 0x151   :  { %633 = vmatpush3.bf16.msra.mxu1 %v349_v36 }
 0x153   :  { %v294_v38 = vpop.f32.mrb[4].mxu0 }
 0x154   :  { %v296_v39 = vpop.f32.mrb[5].mxu0 }
 0x155   :  { %v297_v40 = vpop.f32.mrb[6].mxu0 }
 0x156   :  { %v350_v41 = vpack.c.bf16 %v297_v40, %v294_v38  ;;  %v299_v42 = vpop.f32.mrb[7].mxu0 }
 0x158   :  { %634 = vmatprep.subr.bf16.mxu1 %v350_v41 }
 0x159   :  { %635 = vmatpush3.bf16.msra.mxu1 %v350_v41 }
 0x15b   :  { %v302_v43 = vpop.f32.mrb[8].mxu0 }
 0x15c   :  { %v304_v44 = vpop.f32.mrb[9].mxu0 }
 0x15d   :  { %v305_v45 = vpop.f32.mrb[10].mxu0 }
 0x15e   :  { %v351_v46 = vpack.c.bf16 %v305_v45, %v302_v43  ;;  %v307_v47 = vpop.f32.mrb[11].mxu0 }
 0x160   :  { %636 = vmatprep.subr.bf16.mxu1 %v351_v46 }
 0x161   :  { %637 = vmatpush3.bf16.msra.mxu1 %v351_v46 }
 0x163   :  { %v310_v48 = vpop.f32.mrb[12].mxu0 }
 0x164   :  { %v312_v49 = vpop.f32.mrb[13].mxu0 }
 0x165   :  { %v313_v50 = vpop.f32.mrb[14].mxu0 }
 0x166   :  { %v352_v51 = vpack.c.bf16 %v313_v50, %v310_v48  ;;  %v315_v52 = vpop.f32.mrb[15].mxu0 }
 0x168   :  { %638 = vmatprep.subr.bf16.mxu1 %v352_v51 }
 0x169   :  { %639 = vmatpush3.bf16.msra.mxu1 %v352_v51 }
 0x16b   :  { %v318_v53 = vpop.f32.mrb[16].mxu0 }
 0x16c   :  { %v320_v54 = vpop.f32.mrb[17].mxu0 }
 0x16d   :  { %v321_v55 = vpop.f32.mrb[18].mxu0 }
 0x16e   :  { %v353_v56 = vpack.c.bf16 %v321_v55, %v318_v53  ;;  %v323_v57 = vpop.f32.mrb[19].mxu0 }
 0x170   :  { %640 = vmatprep.subr.bf16.mxu1 %v353_v56 }
 0x171   :  { %641 = vmatpush3.bf16.msra.mxu1 %v353_v56 }
 0x173   :  { %v326_v58 = vpop.f32.mrb[20].mxu0 }
 0x174   :  { %v328_v59 = vpop.f32.mrb[21].mxu0 }
 0x175   :  { %v329_v60 = vpop.f32.mrb[22].mxu0 }
 0x176   :  { %v354_v61 = vpack.c.bf16 %v329_v60, %v326_v58  ;;  %v331_v62 = vpop.f32.mrb[23].mxu0 }
 0x178   :  { %642 = vmatprep.subr.bf16.mxu1 %v354_v61 }
 0x179   :  { %643 = vmatpush3.bf16.msra.mxu1 %v354_v61 }
 0x17b   :  { %v334_v63 = vpop.f32.mrb[24].mxu0 }
 0x17c   :  { %v336_v0 = vpop.f32.mrb[25].mxu0 }
 0x17d   :  { %v337_v1 = vpop.f32.mrb[26].mxu0 }
 0x17e   :  { %v355_v2 = vpack.c.bf16 %v337_v1, %v334_v63  ;;  %v339_v3 = vpop.f32.mrb[27].mxu0 }
 0x180   :  { %644 = vmatprep.subr.bf16.mxu1 %v355_v2 }
 0x181   :  { %645 = vmatpush3.bf16.msra.mxu1 %v355_v2 }
 0x183   :  { %v342_v4 = vpop.f32.mrb[28].mxu0 }
 0x184   :  { %v344_v5 = vpop.f32.mrb[29].mxu0 }
 0x185   :  { %v345_v6 = vpop.f32.mrb[30].mxu0 }
 0x186   :  { %v356_v7 = vpack.c.bf16 %v345_v6, %v342_v4  ;;  %v347_v8 = vpop.f32.mrb[31].mxu0 }
 0x188   :  { %646 = vmatprep.subr.bf16.mxu1 %v356_v7 }
 0x189   :  { %647 = vmatpush3.bf16.msra.mxu1 %v356_v7 }
 0x18c   :  { %649 = vmatmul.mubr.bf16.vlgmr.msra.gmra.mrb[0].mxu1 %v721_v9 }
 0x18d   :  { %652 = vmatprep.mubr.bf16.mxu1 %v722_v10 }
 0x194   :  { %653 = vmatmul.mubr.bf16.gmra.mrb[4].mxu1 %v723_v11 }
 0x195   :  { %656 = vmatprep.mubr.bf16.mxu1 %v724_v12 }
 0x19c   :  { %657 = vmatmul.mubr.bf16.gmra.mrb[8].mxu1 %v725_v13 }
 0x19d   :  { %660 = vmatprep.mubr.bf16.mxu1 %v726_v14 }
 0x1a4   :  { %661 = vmatmul.mubr.bf16.gmra.mrb[12].mxu1 %v727_v15 }
 0x25f   :  { %v650_v17 = vpop.f32.mrb[0].mxu1 }
 0x260   :  { %v471_v18 = vadd.f32 %v650_v17, %v607_v16  ;;  %v462_v19 = vpop.f32.mrb[1].mxu1 }
 0x261   :  { %v463_v20 = vadd.f32 %v607_v16, %v462_v19  ;;  %v651_v21 = vpop.f32.mrb[2].mxu1 }
 0x262   :  { %v527_v22 = vmax.f32 %v471_v18, 0.0  ;;  %v474_v23 = vadd.f32 %v651_v21, %v607_v16  ;;  %v465_v24 = vpop.f32.mrb[3].mxu1 }
 0x263   :  { %v525_v25 = vmax.f32 %v463_v20, 0.0  ;;  %v466_v26 = vadd.f32 %v607_v16, %v465_v24 }
 0x264   :  { %543 = vst [vmem:[#allocation8 + $0x10] sm:$0xff] %v527_v22  ;;  %v528_v27 = vmax.f32 %v474_v23, 0.0 }
 0x265   :  { %541 = vst [vmem:[#allocation8] sm:$0xff] %v525_v25  ;;  %v526_v28 = vmax.f32 %v466_v26, 0.0 }
 0x266   :  { %544 = vst [vmem:[#allocation8 + $0x18] sm:$0xff] %v528_v27 }
 0x267   :  { %542 = vst [vmem:[#allocation8 + $0x8] sm:$0xff] %v526_v28  ;;  %v654_v29 = vpop.f32.mrb[4].mxu1 }
 0x268   :  { %v487_v30 = vadd.f32 %v654_v29, %v607_v16  ;;  %v478_v31 = vpop.f32.mrb[5].mxu1 }
 0x269   :  { %v479_v32 = vadd.f32 %v607_v16, %v478_v31  ;;  %v655_v33 = vpop.f32.mrb[6].mxu1 }
 0x26a   :  { %v531_v34 = vmax.f32 %v487_v30, 0.0  ;;  %v490_v35 = vadd.f32 %v655_v33, %v607_v16  ;;  %v481_v36 = vpop.f32.mrb[7].mxu1 }
 0x26b   :  { %v529_v37 = vmax.f32 %v479_v32, 0.0  ;;  %v482_v38 = vadd.f32 %v607_v16, %v481_v36 }
 0x26c   :  { %547 = vst [vmem:[#allocation8 + $0x30] sm:$0xff] %v531_v34  ;;  %v532_v39 = vmax.f32 %v490_v35, 0.0 }
 0x26d   :  { %545 = vst [vmem:[#allocation8 + $0x20] sm:$0xff] %v529_v37  ;;  %v530_v40 = vmax.f32 %v482_v38, 0.0 }
 0x26e   :  { %548 = vst [vmem:[#allocation8 + $0x38] sm:$0xff] %v532_v39 }
 0x26f   :  { %546 = vst [vmem:[#allocation8 + $0x28] sm:$0xff] %v530_v40  ;;  %v658_v41 = vpop.f32.mrb[8].mxu1 }
 0x270   :  { %v503_v42 = vadd.f32 %v658_v41, %v607_v16  ;;  %v494_v43 = vpop.f32.mrb[9].mxu1 }
 0x271   :  { %v495_v44 = vadd.f32 %v607_v16, %v494_v43  ;;  %v659_v45 = vpop.f32.mrb[10].mxu1 }
 0x272   :  { %v535_v46 = vmax.f32 %v503_v42, 0.0  ;;  %v506_v47 = vadd.f32 %v659_v45, %v607_v16  ;;  %v497_v48 = vpop.f32.mrb[11].mxu1 }
 0x273   :  { %v533_v49 = vmax.f32 %v495_v44, 0.0  ;;  %v498_v50 = vadd.f32 %v607_v16, %v497_v48 }
 0x274   :  { %551 = vst [vmem:[#allocation8 + $0x50] sm:$0xff] %v535_v46  ;;  %v536_v51 = vmax.f32 %v506_v47, 0.0 }
 0x275   :  { %549 = vst [vmem:[#allocation8 + $0x40] sm:$0xff] %v533_v49  ;;  %v534_v52 = vmax.f32 %v498_v50, 0.0 }
 0x276   :  { %552 = vst [vmem:[#allocation8 + $0x58] sm:$0xff] %v536_v51 }
 0x277   :  { %550 = vst [vmem:[#allocation8 + $0x48] sm:$0xff] %v534_v52  ;;  %v662_v53 = vpop.f32.mrb[12].mxu1 }
 0x278   :  { %v519_v54 = vadd.f32 %v662_v53, %v607_v16  ;;  %v510_v55 = vpop.f32.mrb[13].mxu1 }
 0x279   :  { %v511_v56 = vadd.f32 %v607_v16, %v510_v55  ;;  %v663_v57 = vpop.f32.mrb[14].mxu1 }
 0x27a   :  { %v539_v58 = vmax.f32 %v519_v54, 0.0  ;;  %v522_v59 = vadd.f32 %v663_v57, %v607_v16  ;;  %v513_v60 = vpop.f32.mrb[15].mxu1 }
 0x27b   :  { %v537_v61 = vmax.f32 %v511_v56, 0.0  ;;  %v514_v62 = vadd.f32 %v607_v16, %v513_v60 }
 0x27c   :  { %555 = vst [vmem:[#allocation8 + $0x70] sm:$0xff] %v539_v58  ;;  %v540_v63 = vmax.f32 %v522_v59, 0.0 }
 0x27d   :  { %553 = vst [vmem:[#allocation8 + $0x60] sm:$0xff] %v537_v61  ;;  %v538_v0 = vmax.f32 %v514_v62, 0.0 }
 0x27e   :  { %556 = vst [vmem:[#allocation8 + $0x78] sm:$0xff] %v540_v63 }
 0x27f   :  { %554 = vst [vmem:[#allocation8 + $0x68] sm:$0xff] %v538_v0 }
 0x280   :  { %805 = shalt.err (!%p802_p0)
}
 0x281   :  { %s806_s8 = scalar_lea.hbm %s919_s4, 2048 }
 0x282   :  { %p807_p1 = scmp.ne.s32.totalorder %s919_s4, %s806_s8  ;;  %p810_p2 = scmp.lt.u32.totalorder %s806_s8, %s919_s4 }
 0x284   :  { %p812_p3 = pnand %p810_p2, %p807_p1 }
 0x286   :  { %815 = shalt.err (!%p812_p3)
}
 0x287   :  { %568 = dma.vmem_to_hbm [thread:$0]  %s563_s30, 2048, %s919_s4, [#allocation4], %s823_s25, %s823_s25, %s824_s26  }
 0x288   :  { %820 = dma.done.wait [#allocation4], 2048  }
 0x289   :  { %821 = vsyncadd [#allocation4], 4294965248 }
 0x28a   :  { %572 = vsyncpa [#allocation3], 1 }
 0x28b   :  { %573 = vsyncpa [#allocation6], 1 }
 0x28c   :  { %574 = vsyncpa [#allocation4], 1 }

</bundles_post_ra>
